<compile_context>
chip_gen: v7x
topology: tpu7x:2x2x1
jax: 0.10.0
libtpu: 0.0.40
codegen_flags: <defaults>
</compile_context>

<pallas_src>
import jax
import jax.numpy as jnp
from jax.experimental import pallas as pl
from jax.experimental.pallas import tpu as pltpu

_LANE = 128
_SUBLANE = 8
_MAX_BLOCK_BYTES = 2 * 1024 * 1024  # per-block budget; in+out double-buffered ~ 8 MiB


def _copy_kernel(x_ref, o_ref):
    # Identity copy of one lane-dense tile (all the data movement a squeeze needs).
    o_ref[...] = x_ref[...]


def _pick_tiling(total, itemsize):
    """Choose a lane-dense (rows, C) factorization and a row tile TR.

    C is the largest multiple of 128 (<= 4096) that divides `total`, so every
    store is a full, unmasked vst.  Returns None if no such C exists (then the
    caller falls back to the zero-copy reshape)."""
    c = 0
    cand = _LANE
    while cand <= 4096:
        if total % cand == 0:
            c = cand
        cand += _LANE
    if c == 0:
        return None
    rows = total // c
    # Row tile: multiple of 8 sublanes, capped so one block stays <= _MAX_BLOCK_BYTES.
    max_tr = max(_SUBLANE,
                 (_MAX_BLOCK_BYTES // (c * itemsize)) // _SUBLANE * _SUBLANE)
    tr = rows if rows <= max_tr else max_tr  # full-dim blocks are always legal
    return rows, c, tr


def _pallas_copy_2d(flat2d, rows, c, tr):
    grid = (pl.cdiv(rows, tr),)
    return pl.pallas_call(
        _copy_kernel,
        out_shape=jax.ShapeDtypeStruct((rows, c), flat2d.dtype),
        grid=grid,
        in_specs=[pl.BlockSpec((tr, c), lambda i: (i, 0))],
        out_specs=pl.BlockSpec((tr, c), lambda i: (i, 0)),
        compiler_params=pltpu.CompilerParams(
            # independent tiles -> shard across both TCs on v7x
            dimension_semantics=("parallel",),
            # safe on all generations (v7x default, below v5e/v6e physical)
            vmem_limit_bytes=32 * 1024 * 1024,
        ),
    )(flat2d)


def pallas_squeeze(x, axis=-1, use_kernel=True):
    """torch.Tensor.squeeze(axis) semantics:
       - if x.shape[axis] == 1: remove that dim
       - else: no-op (shape unchanged)
    `use_kernel=False` gives the purely-metadata (zero-copy) path."""
    if x.ndim == 0:
        return x  # torch: squeeze(dim) on a 0-d tensor is a no-op
    ax = axis % x.ndim
    if x.shape[ax] != 1:
        return x  # no-op when the dim size != 1 (matches torch)
    out_shape = x.shape[:ax] + x.shape[ax + 1:]

    total = x.size
    if not use_kernel or total == 0:
        # Squeeze is pure shape metadata: zero-copy reshape, no HBM traffic.
        return x.reshape(out_shape)

    tiling = _pick_tiling(total, x.dtype.itemsize)
    if tiling is None:
        # Element count not a multiple of 128: a copy kernel would be all
        # masked partial stores; take the zero-copy metadata path instead.
        return x.reshape(out_shape)

    rows, c, tr = tiling
    flat = x.reshape(rows, c)          # lane-dense 2-D view (reshape is free)
    out = _pallas_copy_2d(flat, rows, c, tr)
    return out.reshape(out_shape)


if __name__ == "__main__":
    key = jax.random.PRNGKey(0)

    # Shape consistent with tidnet's use of Squeeze: a conv output whose last
    # spatial dim has been reduced to 1, e.g. (batch=2, channels=4, H=16, W=1).
    x = jax.random.normal(key, (2, 4, 16, 1), dtype=jnp.float32)
    y = jax.block_until_ready(pallas_squeeze(x, axis=-1))
    ref = jnp.squeeze(x, axis=-1)
    assert y.shape == (2, 4, 16), y.shape
    assert y.dtype == x.dtype
    assert bool(jnp.array_equal(y, ref))

    # Middle-axis squeeze, larger lane-dense slab (exercises the tiled path).
    x2 = jax.random.normal(key, (4, 1, 32, 64), dtype=jnp.float32)
    y2 = jax.block_until_ready(pallas_squeeze(x2, axis=1))
    assert y2.shape == (4, 32, 64), y2.shape
    assert bool(jnp.array_equal(y2, jnp.squeeze(x2, axis=1)))

    # dim size != 1 -> no-op, matching torch.Tensor.squeeze(dim).
    x3 = jax.random.normal(key, (2, 4, 16, 3), dtype=jnp.float32)
    y3 = jax.block_until_ready(pallas_squeeze(x3, axis=-1))
    assert y3.shape == (2, 4, 16, 3), y3.shape
    assert bool(jnp.array_equal(y3, x3))

    # Element count not a multiple of 128 -> zero-copy metadata path.
    x4 = jax.random.normal(key, (2, 3, 5, 1), dtype=jnp.float32)
    y4 = jax.block_until_ready(pallas_squeeze(x4, axis=-1))
    assert y4.shape == (2, 3, 5), y4.shape
    assert bool(jnp.array_equal(y4, jnp.squeeze(x4, axis=-1)))

    print("KERNEL_OK")
</pallas_src>

<mosaic_0001>
module attributes {stable_mosaic.version = 11 : i64} {
  func.func @_copy_kernel(%arg0: i32, %arg1: memref<1x128xf32, #tpu.memory_space<vmem>>, %arg2: memref<1x128xf32, #tpu.memory_space<vmem>>) attributes {dimension_semantics = [#tpu.dimension_semantics<parallel>], iteration_bounds = array<i64: 1>, scalar_prefetch = 0 : i64, scratch_operands = 0 : i64, tpu.core_type = #tpu.core_type<tc>, window_params = [{transform_indices = @transform_0, window_bounds = array<i64: 1, 128>}, {transform_indices = @transform_1, window_bounds = array<i64: 1, 128>}]} {
    %c0 = arith.constant 0 : index
    %c0_0 = arith.constant 0 : index
    %0 = vector.load %arg1[%c0, %c0_0] : memref<1x128xf32, #tpu.memory_space<vmem>>, vector<1x128xf32>
    %c0_1 = arith.constant 0 : index
    %c0_2 = arith.constant 0 : index
    %1 = vector.load %arg2[%c0_1, %c0_2] : memref<1x128xf32, #tpu.memory_space<vmem>>, vector<1x128xf32>
    tpu.vector_store %arg2[%c0_1, %c0_2], %0 {strides = array<i32>} : memref<1x128xf32, #tpu.memory_space<vmem>>, vector<1x128xf32>,
    return
  }
  func.func @transform_0(%arg0: i32) -> (i32, i32) {
    %c0_i32 = arith.constant 0 : i32
    %c0_i32_0 = arith.constant 0 : i32
    return %arg0, %c0_i32 : i32, i32
  }
  func.func @transform_1(%arg0: i32) -> (i32, i32) {
    %c0_i32 = arith.constant 0 : i32
    %c0_i32_0 = arith.constant 0 : i32
    return %arg0, %c0_i32 : i32, i32
  }
}

</mosaic_0001>

<bundles_post_ra>
// kernel: tpu_custom_call.1
= control target key start
LH: loop header
LB: loop body
LE: loop exit
PB: predicated region body
PF: predicated region fallthrough
CT: control target
= control target key end

     0   :  { %6 = vsyncpa [#allocation3], 0  ;;  %s124_s0 = inlined_call_operand.hbm [shape: f32[1,128], index: 0, kind: input, shape index: {}]   ;;  %s125_s1 = inlined_call_operand.hbm [shape: f32[1,128], index: 1, kind: output, shape index: {}]  }
   0x1   :  { %7 = vsyncpa [#allocation4], 0  ;;  %s88_s6 = smov [#allocation2]   ;;  %s40_s10 = scalar_lea.hbm %s124_s0, 16 }
   0x2   :  { %s14_s7 = sshll.u32 %s88_s6, 4  ;;  %p41_p0 = scmp.ne.s32.totalorder %s124_s0, %s40_s10  ;;  %s15_s7 = int_to_ptr.vmem [resolvable:$true] %s14_s7 }
   0x3   :  { %p44_p1 = scmp.lt.u32.totalorder %s40_s10, %s124_s0 }
   0x5   :  { %p46_p2 = pnand %p44_p1, %p41_p0 }
   0x7   :  { %49 = shalt.err (!%p46_p2)
}
   0x8   :  { %s50_s15 = scalar_lea.vmem %s15_s7, 16  ;;  %s54_s16 = scalar_lea.vmem %s15_s7, 32 }
   0x9   :  { %p51_p3 = scmp.ne.s32.totalorder %s15_s7, %s50_s15  ;;  %p55_p4 = scmp.lt.s32.totalorder %s15_s7, %s15_s7 }
   0xa   :  { %p56_p5 = scmp.lt.s32.totalorder %s54_s16, %s50_s15 }
   0xc   :  { %p57_p6 = por %p56_p5, %p55_p4 }
   0xe   :  { %p58_p7 = pnand %p57_p6, %p51_p3 }
  0x10   :  { %61 = shalt.err (!%p58_p7)
}
  0x11   :  { %17 = dma.hbm_to_vmem [thread:$0]  %s124_s0, 16, %s15_s7, [#allocation3]  }
  0x12   :  { %84 = dma.done.wait [#allocation3], 16  }
  0x13   :  { %85 = vsyncadd [#allocation3], 4294967280  ;;  %s89_s19 = smov [#allocation5]   ;;  %v21_v0 = vld [vmem:[#allocation2] sm:$0x1] }
  0x14   :  { %s29_s20 = sshll.u32 %s89_s19, 4  ;;  %22 = vst [vmem:[#allocation5] sm:$0x1] %v21_v0  ;;  %s30_s20 = int_to_ptr.vmem [resolvable:$true] %s29_s20 }
  0x15   :  { %s62_s21 = scalar_lea.vmem %s30_s20, 16  ;;  %s66_s22 = scalar_lea.vmem %s30_s20, 32 }
  0x16   :  { %p63_p8 = scmp.ne.s32.totalorder %s30_s20, %s62_s21  ;;  %p67_p9 = scmp.lt.s32.totalorder %s30_s20, %s30_s20 }
  0x17   :  { %p68_p10 = scmp.lt.s32.totalorder %s66_s22, %s62_s21 }
  0x19   :  { %p69_p11 = por %p68_p10, %p67_p9 }
  0x1b   :  { %p70_p12 = pnand %p69_p11, %p63_p8 }
  0x1d   :  { %73 = shalt.err (!%p70_p12)
}
  0x1e   :  { %s74_s25 = scalar_lea.hbm %s125_s1, 16 }
  0x1f   :  { %p75_p13 = scmp.ne.s32.totalorder %s125_s1, %s74_s25  ;;  %p78_p0 = scmp.lt.u32.totalorder %s74_s25, %s125_s1 }
  0x21   :  { %p80_p1 = pnand %p78_p0, %p75_p13 }
  0x23   :  { %83 = shalt.err (!%p80_p1)
}
  0x24   :  { %32 = dma.vmem_to_hbm [thread:$0]  %s30_s20, 16, %s125_s1, [#allocation4]  }
  0x25   :  { %86 = dma.done.wait [#allocation4], 16  }
  0x26   :  { %87 = vsyncadd [#allocation4], 4294967280 }
  0x27   :  { %36 = vsyncpa [#allocation3], 1 }
  0x28   :  { %37 = vsyncpa [#allocation4], 1 }

</bundles_post_ra>
